<compile_context>
chip_gen: v7x
topology: tpu7x:2x2x1
jax: 0.10.0
libtpu: 0.0.40
codegen_flags: <defaults>
</compile_context>

<pallas_src>
import numpy as np
import jax
import jax.numpy as jnp
from jax.experimental import pallas as pl
from jax.experimental.pallas import tpu as pltpu

# --- torchaudio MelSpectrogram(sample_rate=500, n_fft=256, hop_length=128,
#                               n_mels=128, f_min=0.5, f_max=100.0) defaults ---
SAMPLE_RATE = 500
N_FFT = 256
HOP = 128
NF = 128                     # truncated onesided rFFT bins kept (exact, see assertion below)
F_MIN, F_MAX = 0.5, 100.0
EPS = 1e-8


def _hz_to_mel_htk(f):
    return 2595.0 * np.log10(1.0 + np.asarray(f, np.float64) / 700.0)


def _mel_to_hz_htk(m):
    return 700.0 * (10.0 ** (np.asarray(m, np.float64) / 2595.0) - 1.0)


def mel_filterbank(n_freqs, n_mels, sample_rate, f_min, f_max):
    """Replicates torchaudio.functional.melscale_fbanks (htk scale, norm=None)."""
    all_freqs = np.linspace(0.0, sample_rate // 2, n_freqs)
    m_pts = np.linspace(_hz_to_mel_htk(f_min), _hz_to_mel_htk(f_max), n_mels + 2)
    f_pts = _mel_to_hz_htk(m_pts)
    f_diff = f_pts[1:] - f_pts[:-1]
    slopes = f_pts[None, :] - all_freqs[:, None]
    down = -slopes[:, :-2] / f_diff[:-1]
    up = slopes[:, 2:] / f_diff[1:]
    fb = np.maximum(0.0, np.minimum(down, up))          # (n_freqs, n_mels)
    return fb.astype(np.float32)


def specgen_kernel(frames_ref, dft_ref, melfb_ref, fuse_ref, bias_ref, out_ref):
    """One fat batch-block per grid step. Three MXU matmuls, one lane-dense store.

    frames_ref : (1, M, N_FFT)          VMEM, M = Bb*C*F rows (Hann folded into dft_ref)
    dft_ref    : (N_FFT, 2*NF)          VMEM, [win*cos | win*sin]
    melfb_ref  : (NF, n_mels)           VMEM
    fuse_ref   : (Mout_pad, M)     f32  VMEM, sparse 1x1-conv fusion matrix (C -> 3)
    bias_ref   : (Mout_pad, 1)     f32  VMEM, per-output-row conv bias
    out_ref    : (1, Mout_pad, n_mels)  VMEM f32
    """
    x = frames_ref[0]                                                       # (M, N_FFT)

    # Single DFT matmul producing [re | im] on the MXU; lane slice at 128 boundary is free.
    ri = jnp.dot(x, dft_ref[...], preferred_element_type=jnp.float32)       # (M, 2*NF)
    nf = melfb_ref.shape[0]
    re = ri[:, :nf]
    im = ri[:, nf:]
    power = re * re + im * im                                               # (M, NF) f32

    # Mel projection for all batch-block rows / channels / frames at once.
    mel = jnp.dot(power.astype(melfb_ref.dtype), melfb_ref[...],
                  preferred_element_type=jnp.float32)                       # (M, n_mels)

    # 1x1 channel fusion (C -> 3) as one tiny matmul, then bias + log, single unmasked store.
    fused = jnp.dot(fuse_ref[...], mel, preferred_element_type=jnp.float32)  # (Mout_pad, n_mels)
    out_ref[0] = jnp.log(fused + bias_ref[...] + EPS)


def _n_steps_for_device(batch):
    """2 parallel grid steps only on 2-TensorCore chips (v7x); 1 fat step otherwise."""
    kind = ""
    try:
        kind = jax.devices()[0].device_kind.lower()
    except Exception:
        pass
    if batch >= 2 and "v7" in kind:
        return 2
    return 1


def spectrogram_generator(eeg, w_fuse, b_fuse, mel_bins=128, use_bf16=True):
    """eeg: (B, C, T) float32 -> (B, 3, mel_bins, n_frames) float32."""
    B, C, T = eeg.shape
    n_frames = 1 + T // HOP
    pad = N_FFT // 2
    mm_dtype = jnp.bfloat16 if use_bf16 else jnp.float32

    # --- constants: periodic hann folded into fused [cos | sin] DFT basis, mel filterbank ---
    n = np.arange(N_FFT, dtype=np.float64)
    window = 0.5 - 0.5 * np.cos(2.0 * np.pi * n / N_FFT)          # periodic hann
    k = np.arange(NF, dtype=np.float64)                            # truncated bins 0..NF-1
    ang = 2.0 * np.pi * np.outer(n, k) / N_FFT
    dft = np.concatenate(
        [window[:, None] * np.cos(ang), window[:, None] * np.sin(ang)], axis=1
    ).astype(np.float32)                                           # (N_FFT, 2*NF)

    melfb_full = mel_filterbank(N_FFT // 2 + 1, mel_bins, SAMPLE_RATE, F_MIN, F_MAX)
    # The 129 -> NF truncation is exact only if every dropped frequency row has zero mel weight.
    assert not np.any(melfb_full[NF:]), "frequency truncation would not be exact"
    melfb = melfb_full[:NF]                                        # (NF, n_mels)

    # --- STFT framing (center=True, reflect pad) — wrapper glue, slices + stack (no gather) ---
    padded = jnp.pad(eeg, ((0, 0), (0, 0), (pad, pad)), mode="reflect")
    frames = jnp.stack(
        [padded[:, :, f * HOP:f * HOP + N_FFT] for f in range(n_frames)], axis=2
    ).astype(jnp.float32)                                          # (B, C, F, N_FFT)

    # --- grid-step selection: 1 on v5e/v6e, ceil 2-way batch split on v7x ---
    n_steps = _n_steps_for_device(B)
    B_pad = n_steps * ((B + n_steps - 1) // n_steps)
    if B_pad != B:
        frames = jnp.pad(frames, ((0, B_pad - B), (0, 0), (0, 0), (0, 0)))
    Bb = B_pad // n_steps
    M = Bb * C * n_frames
    frames = frames.reshape(n_steps, M, N_FFT).astype(mm_dtype)    # rows = (b_local, c, f)

    # --- fusion matrix S and bias column for the 1x1 conv (C -> 3), rows padded to x8 ---
    Mout = Bb * 3 * n_frames
    Mout_pad = ((Mout + 7) // 8) * 8
    fuse = jnp.kron(
        jnp.eye(Bb, dtype=jnp.float32),
        jnp.kron(w_fuse.astype(jnp.float32), jnp.eye(n_frames, dtype=jnp.float32)),
    )                                                              # (Mout, M), S[(b,o,f),(b,c,f)] = w[o,c]
    fuse = jnp.pad(fuse, ((0, Mout_pad - Mout), (0, 0)))
    bias = jnp.tile(jnp.repeat(b_fuse.astype(jnp.float32), n_frames), Bb)
    bias = jnp.pad(bias, (0, Mout_pad - Mout)).reshape(Mout_pad, 1)

    out = pl.pallas_call(
        specgen_kernel,
        out_shape=jax.ShapeDtypeStruct((n_steps, Mout_pad, mel_bins), jnp.float32),
        grid_spec=pltpu.PrefetchScalarGridSpec(
            num_scalar_prefetch=0,
            grid=(n_steps,),
            in_specs=[
                pl.BlockSpec((1, M, N_FFT), lambda i: (i, 0, 0)),
                pl.BlockSpec((N_FFT, 2 * NF), lambda i: (0, 0)),
                pl.BlockSpec((NF, mel_bins), lambda i: (0, 0)),
                pl.BlockSpec((Mout_pad, M), lambda i: (0, 0)),
                pl.BlockSpec((Mout_pad, 1), lambda i: (0, 0)),
            ],
            out_specs=pl.BlockSpec((1, Mout_pad, mel_bins), lambda i: (i, 0, 0)),
        ),
        compiler_params=pltpu.CompilerParams(dimension_semantics=("parallel",)),
    )(frames, jnp.asarray(dft, dtype=mm_dtype), jnp.asarray(melfb, dtype=mm_dtype), fuse, bias)

    # Strip row padding, restore (B, 3, F, mel), drop batch padding, transpose to PyTorch NCHW
    # (B, 3, n_mels, n_frames). Transpose stays outside the kernel: n_frames (9) is far from lane
    # width, so an in-kernel transpose would force masked partial stores.
    out = out[:, :Mout].reshape(n_steps, Bb, 3, n_frames, mel_bins)
    out = out.reshape(B_pad, 3, n_frames, mel_bins)[:B]
    return jnp.transpose(out, (0, 1, 3, 2))


if __name__ == "__main__":
    B, C, T = 2, 4, 1024          # eeg_channels=4, small time length
    MEL_BINS = 128

    key = jax.random.PRNGKey(0)
    k_x, k_w, k_b = jax.random.split(key, 3)
    eeg = jax.random.normal(k_x, (B, C, T), dtype=jnp.float32)

    # Deterministic 1x1 Conv2d(eeg_channels -> 3) parameters (weight (3,C,1,1) squeezed to (3,C)).
    w_fuse = jax.random.normal(k_w, (3, C), dtype=jnp.float32) / np.sqrt(C)
    b_fuse = jax.random.normal(k_b, (3,), dtype=jnp.float32) * 0.01

    out = spectrogram_generator(eeg, w_fuse, b_fuse, mel_bins=MEL_BINS)
    out = jax.block_until_ready(out)

    n_frames = 1 + T // HOP
    assert out.shape == (B, 3, MEL_BINS, n_frames), out.shape
    assert out.dtype == jnp.float32
    print("KERNEL_OK")
</pallas_src>

<mosaic_0001>
module attributes {stable_mosaic.version = 11 : i64} {
  func.func @specgen_kernel(%arg0: i32, %arg1: memref<1x72x256xbf16, #tpu.memory_space<vmem>>, %arg2: memref<256x256xbf16, #tpu.memory_space<vmem>>, %arg3: memref<128x128xbf16, #tpu.memory_space<vmem>>, %arg4: memref<56x72xf32, #tpu.memory_space<vmem>>, %arg5: memref<56x1xf32, #tpu.memory_space<vmem>>, %arg6: memref<1x56x128xf32, #tpu.memory_space<vmem>>) attributes {dimension_semantics = [#tpu.dimension_semantics<parallel>], iteration_bounds = array<i64: 1>, scalar_prefetch = 0 : i64, scratch_operands = 0 : i64, tpu.core_type = #tpu.core_type<tc>, window_params = [{transform_indices = @transform_0, window_bounds = array<i64: 1, 72, 256>}, {pipeline_mode = #tpu.pipeline_mode<synchronous>, transform_indices = @transform_1, window_bounds = array<i64: 256, 256>}, {pipeline_mode = #tpu.pipeline_mode<synchronous>, transform_indices = @transform_2, window_bounds = array<i64: 128, 128>}, {pipeline_mode = #tpu.pipeline_mode<synchronous>, transform_indices = @transform_3, window_bounds = array<i64: 56, 72>}, {pipeline_mode = #tpu.pipeline_mode<synchronous>, transform_indices = @transform_4, window_bounds = array<i64: 56, 1>}, {transform_indices = @transform_5, window_bounds = array<i64: 1, 56, 128>}]} {
    %c0 = arith.constant 0 : index
    %c0_0 = arith.constant 0 : index
    %c0_1 = arith.constant 0 : index
    %0 = vector.load %arg1[%c0, %c0_0, %c0_1] : memref<1x72x256xbf16, #tpu.memory_space<vmem>>, vector<1x72x256xbf16>
    %1 = vector.shape_cast %0 : vector<1x72x256xbf16> to vector<72x256xbf16>
    %c0_2 = arith.constant 0 : index
    %c0_3 = arith.constant 0 : index
    %2 = vector.load %arg2[%c0_2, %c0_3] : memref<256x256xbf16, #tpu.memory_space<vmem>>, vector<256x256xbf16>
    %cst = arith.constant dense<0.000000e+00> : vector<72x256xf32>
    %3 = tpu.matmul %1, %2, %cst {dimension_numbers = #tpu.dot_dimension_numbers<[1], [0], [0], [1], [0, 0, 1, 1], [], []>} : vector<72x256xbf16>, vector<256x256xbf16>, vector<72x256xf32> -> vector<72x256xf32>
    %4 = vector.extract_strided_slice %3 {offsets = [0, 0], sizes = [72, 128], strides = [1, 1]} : vector<72x256xf32> to vector<72x128xf32>
    %5 = vector.extract_strided_slice %3 {offsets = [0, 128], sizes = [72, 128], strides = [1, 1]} : vector<72x256xf32> to vector<72x128xf32>
    %6 = arith.mulf %4, %4 : vector<72x128xf32>
    %7 = arith.mulf %5, %5 : vector<72x128xf32>
    %8 = arith.addf %6, %7 : vector<72x128xf32>
    %9 = arith.truncf %8 : vector<72x128xf32> to vector<72x128xbf16>
    %c0_4 = arith.constant 0 : index
    %c0_5 = arith.constant 0 : index
    %10 = vector.load %arg3[%c0_4, %c0_5] : memref<128x128xbf16, #tpu.memory_space<vmem>>, vector<128x128xbf16>
    %cst_6 = arith.constant dense<0.000000e+00> : vector<72x128xf32>
    %11 = tpu.matmul %9, %10, %cst_6 {dimension_numbers = #tpu.dot_dimension_numbers<[1], [0], [0], [1], [0, 0, 1, 1], [], []>} : vector<72x128xbf16>, vector<128x128xbf16>, vector<72x128xf32> -> vector<72x128xf32>
    %c0_7 = arith.constant 0 : index
    %c0_8 = arith.constant 0 : index
    %12 = vector.load %arg4[%c0_7, %c0_8] : memref<56x72xf32, #tpu.memory_space<vmem>>, vector<56x72xf32>
    %cst_9 = arith.constant dense<0.000000e+00> : vector<56x128xf32>
    %13 = tpu.matmul %12, %11, %cst_9 {dimension_numbers = #tpu.dot_dimension_numbers<[1], [0], [0], [1], [0, 0, 1, 1], [], []>} : vector<56x72xf32>, vector<72x128xf32>, vector<56x128xf32> -> vector<56x128xf32>
    %c0_10 = arith.constant 0 : index
    %c0_11 = arith.constant 0 : index
    %14 = vector.load %arg5[%c0_10, %c0_11] : memref<56x1xf32, #tpu.memory_space<vmem>>, vector<56x1xf32>
    %15 = vector.broadcast %14 : vector<56x1xf32> to vector<56x128xf32>
    %16 = arith.addf %13, %15 : vector<56x128xf32>
    %cst_12 = arith.constant 9.99999993E-9 : f32
    %17 = vector.broadcast %cst_12 : f32 to vector<56x128xf32>
    %18 = arith.addf %16, %17 : vector<56x128xf32>
    %19 = math.log %18 : vector<56x128xf32>
    %c0_13 = arith.constant 0 : index
    %c0_14 = arith.constant 0 : index
    %c0_15 = arith.constant 0 : index
    %20 = vector.load %arg6[%c0_13, %c0_14, %c0_15] : memref<1x56x128xf32, #tpu.memory_space<vmem>>, vector<1x56x128xf32>
    %21 = vector.shape_cast %20 : vector<1x56x128xf32> to vector<56x128xf32>
    %22 = vector.shape_cast %19 : vector<56x128xf32> to vector<1x56x128xf32>
    tpu.vector_store %arg6[%c0_13, %c0_14, %c0_15], %22 {strides = array<i32>} : memref<1x56x128xf32, #tpu.memory_space<vmem>>, vector<1x56x128xf32>,
    return
  }
  func.func @transform_0(%arg0: i32) -> (i32, i32, i32) {
    %c0_i32 = arith.constant 0 : i32
    %c0_i32_0 = arith.constant 0 : i32
    %c0_i32_1 = arith.constant 0 : i32
    return %arg0, %c0_i32, %c0_i32_0 : i32, i32, i32
  }
  func.func @transform_1(%arg0: i32) -> (i32, i32) {
    %c0_i32 = arith.constant 0 : i32
    %c0_i32_0 = arith.constant 0 : i32
    %c0_i32_1 = arith.constant 0 : i32
    return %c0_i32, %c0_i32_0 : i32, i32
  }
  func.func @transform_2(%arg0: i32) -> (i32, i32) {
    %c0_i32 = arith.constant 0 : i32
    %c0_i32_0 = arith.constant 0 : i32
    %c0_i32_1 = arith.constant 0 : i32
    return %c0_i32, %c0_i32_0 : i32, i32
  }
  func.func @transform_3(%arg0: i32) -> (i32, i32) {
    %c0_i32 = arith.constant 0 : i32
    %c0_i32_0 = arith.constant 0 : i32
    %c0_i32_1 = arith.constant 0 : i32
    return %c0_i32, %c0_i32_0 : i32, i32
  }
  func.func @transform_4(%arg0: i32) -> (i32, i32) {
    %c0_i32 = arith.constant 0 : i32
    %c0_i32_0 = arith.constant 0 : i32
    %c0_i32_1 = arith.constant 0 : i32
    return %c0_i32, %c0_i32_0 : i32, i32
  }
  func.func @transform_5(%arg0: i32) -> (i32, i32, i32) {
    %c0_i32 = arith.constant 0 : i32
    %c0_i32_0 = arith.constant 0 : i32
    %c0_i32_1 = arith.constant 0 : i32
    return %arg0, %c0_i32, %c0_i32_0 : i32, i32, i32
  }
}

</mosaic_0001>

<bundles_post_ra>
// kernel: tpu_custom_call.1
= control target key start
LH: loop header
LB: loop body
LE: loop exit
PB: predicated region body
PF: predicated region fallthrough
CT: control target
= control target key end

     0   :  { %10 = vsyncpa [#allocation3], 0  ;;  %s1332_s0 = inlined_call_operand.hbm [shape: bf16[1,72,256], index: 0, kind: input, shape index: {}]   ;;  %s1333_s1 = inlined_call_operand.hbm [shape: bf16[256,256], index: 1, kind: input, shape index: {}]   ;;  %s1334_s2 = inlined_call_operand.vmem [shape: bf16[128,128], index: 2, kind: input, shape index: {}]   ;;  %s1335_s3 = inlined_call_operand.hbm [shape: f32[56,72], index: 3, kind: input, shape index: {}]   ;;  %s1336_s4 = inlined_call_operand.vmem [shape: f32[56,1], index: 4, kind: input, shape index: {}]   ;;  %s1337_s5 = inlined_call_operand.hbm [shape: f32[1,56,128], index: 5, kind: output, shape index: {}]  }
   0x1   :  { %11 = vsyncpa [#allocation6], 0 }
   0x2   :  { %12 = vsyncpa [#allocation4], 0  ;;  %s1140_s18 = smov [#allocation5]   ;;  %s1141_s20 = smov [#allocation2]  }
   0x3   :  { %s30_s19 = sshll.u32 %s1140_s18, 4  ;;  %s18_s21 = sshll.u32 %s1141_s20, 4  ;;  %s31_s19 = int_to_ptr.vmem [resolvable:$true] %s30_s19  ;;  %s1180_s21 = int_to_ptr.vmem [resolvable:$true] %s18_s21 }
   0x4   :  { %s1046_s24 = scalar_lea.hbm %s1333_s1, 4096 }
   0x5   :  { %p1047_p0 = scmp.ne.s32.totalorder %s1333_s1, %s1046_s24  ;;  %p1050_p1 = scmp.lt.u32.totalorder %s1046_s24, %s1333_s1 }
   0x7   :  { %p1052_p2 = pnand %p1050_p1, %p1047_p0 }
   0x9   :  { %1055 = shalt.err (!%p1052_p2)
}
   0xa   :  { %s1056_s29 = scalar_lea.vmem %s31_s19, 4096  ;;  %p1061_p4 = scmp.lt.s32.totalorder %s31_s19, %s31_s19 }
   0xb   :  { %p1057_p3 = scmp.ne.s32.totalorder %s31_s19, %s1056_s29  ;;  %p1062_p5 = scmp.lt.s32.totalorder %s1056_s29, %s1056_s29 }
   0xd   :  { %p1063_p6 = por %p1062_p5, %p1061_p4 }
   0xf   :  { %p1064_p7 = pnand %p1063_p6, %p1057_p3 }
  0x11   :  { %1067 = shalt.err (!%p1064_p7)
}
  0x12   :  { %s1142_s30 = smov 128   ;;  %s1143_s6 = smov 8  }
  0x13   :  { %36 = dma.hbm_to_vmem [thread:$0]  %s1333_s1, 4096, %s31_s19, [#allocation6], %s1142_s30, %s1142_s30, %s1143_s6  }
  0x14   :  { %s1068_s11 = scalar_lea.hbm %s1332_s0, 1152 }
  0x15   :  { %p1069_p8 = scmp.ne.s32.totalorder %s1332_s0, %s1068_s11  ;;  %p1072_p9 = scmp.lt.u32.totalorder %s1068_s11, %s1332_s0 }
  0x17   :  { %p1074_p10 = pnand %p1072_p9, %p1069_p8 }
  0x19   :  { %1077 = shalt.err (!%p1074_p10)
}
  0x1a   :  { %s1078_s16 = scalar_lea.vmem %s1180_s21, 1152  ;;  %p1083_p12 = scmp.lt.s32.totalorder %s1180_s21, %s1180_s21 }
  0x1b   :  { %p1079_p11 = scmp.ne.s32.totalorder %s1180_s21, %s1078_s16  ;;  %p1084_p13 = scmp.lt.s32.totalorder %s1078_s16, %s1078_s16 }
  0x1d   :  { %p1085_p0 = por %p1084_p13, %p1083_p12 }
  0x1f   :  { %p1086_p1 = pnand %p1085_p0, %p1079_p11 }
  0x21   :  { %1089 = shalt.err (!%p1086_p1)
}
  0x22   :  { %24 = dma.hbm_to_vmem [thread:$0]  %s1332_s0, 1152, %s1180_s21, [#allocation3], %s1142_s30, %s1142_s30, %s1143_s6  }
  0x23   :  { %s1144_s18 = smov [#allocation7]   ;;  %s1090_s23 = scalar_lea.hbm %s1335_s3, 896 }
  0x24   :  { %s44_s19 = sshll.u32 %s1144_s18, 4  ;;  %p1091_p2 = scmp.ne.s32.totalorder %s1335_s3, %s1090_s23  ;;  %s45_s19 = int_to_ptr.vmem [resolvable:$true] %s44_s19 }
  0x25   :  { %p1094_p3 = scmp.lt.u32.totalorder %s1090_s23, %s1335_s3 }
  0x27   :  { %p1096_p4 = pnand %p1094_p3, %p1091_p2 }
  0x29   :  { %1099 = shalt.err (!%p1096_p4)
}
  0x2a   :  { %s1100_s28 = scalar_lea.vmem %s45_s19, 896  ;;  %p1105_p6 = scmp.lt.s32.totalorder %s45_s19, %s45_s19 }
  0x2b   :  { %p1101_p5 = scmp.ne.s32.totalorder %s45_s19, %s1100_s28  ;;  %p1106_p7 = scmp.lt.s32.totalorder %s1100_s28, %s1100_s28 }
  0x2d   :  { %p1107_p8 = por %p1106_p7, %p1105_p6 }
  0x2f   :  { %p1108_p9 = pnand %p1107_p8, %p1101_p5 }
  0x31   :  { %1111 = shalt.err (!%p1108_p9)
}
  0x32   :  { %50 = dma.hbm_to_vmem [thread:$0]  %s1335_s3, 896, %s45_s19, [#allocation6], %s1142_s30, %s1142_s30, %s1143_s6  }
  0x33   :  { %1134 = dma.done.wait [#allocation3], 1152  }
  0x34   :  { %1135 = vsyncadd [#allocation3], 4294966144 }
  0x35   :  { %1136 = dma.done.wait [#allocation6], 4992  }
  0x36   :  { %1137 = vsyncadd [#allocation6], 4294962304  ;;  %v1145_v0 = vmov 0.0   ;;  %v962_v1 = vld [vmem:[#allocation5 + $0x4] ss:$8 sps:$4 sm:$0xff]   ;;  %v1024_v18 = vld [vmem:[%s1334_s2] sm:$0xff]  }
  0x37   :  { %863 = vmatprep.subr.bf16.mxu1 %v1145_v0  ;;  %v964_v2 = vld [vmem:[#allocation5] ss:$8 sps:$4 sm:$0xff]   ;;  %311 = vmatprep.subr.bf16.mxu0 %v962_v1  ;;  %v965_v3 = vld [vmem:[#allocation5 + $0x14] ss:$8 sps:$4 sm:$0xff]   ;;  %v967_v4 = vld [vmem:[#allocation5 + $0x10] ss:$8 sps:$4 sm:$0xff]  }
  0x38   :  { %312 = vmatpush1.bf16.msra.mxu0 %v964_v2  ;;  %v968_v5 = vld [vmem:[#allocation5 + $0x24] ss:$8 sps:$4 sm:$0xff]   ;;  %v970_v6 = vld [vmem:[#allocation5 + $0x20] ss:$8 sps:$4 sm:$0xff]   ;;  %v971_v7 = vld [vmem:[#allocation5 + $0x34] ss:$8 sps:$4 sm:$0xff]   ;;  %864 = vmatpush3.bf16.msra.mxu1 %v1024_v18 }
  0x39   :  { %313 = vmatprep.subr.bf16.mxu0 %v965_v3  ;;  %v973_v8 = vld [vmem:[#allocation5 + $0x30] ss:$8 sps:$4 sm:$0xff]   ;;  %v974_v9 = vld [vmem:[#allocation5 + $0x44] ss:$8 sps:$4 sm:$0xff]   ;;  %v976_v10 = vld [vmem:[#allocation5 + $0x40] ss:$8 sps:$4 sm:$0xff]   ;;  %865 = vmatprep.subr.bf16.mxu1 %v1145_v0 }
  0x3a   :  { %v977_v11 = vld [vmem:[#allocation5 + $0x54] ss:$8 sps:$4 sm:$0xff]   ;;  %v979_v12 = vld [vmem:[#allocation5 + $0x50] ss:$8 sps:$4 sm:$0xff]   ;;  %v980_v13 = vld [vmem:[#allocation5 + $0x64] ss:$8 sps:$4 sm:$0xff]  }
  0x3b   :  { %v1012_v14 = vld [vmem:[#allocation2 + $0x4] ss:$8 sps:$4 sm:$0xff]   ;;  %v982_v15 = vld [vmem:[#allocation5 + $0x60] ss:$8 sps:$4 sm:$0xff]   ;;  %v985_v17 = vld [vmem:[#allocation5 + $0x70] ss:$8 sps:$4 sm:$0xff]  }
  0x3c   :  { %314 = vmatpush1.bf16.msra.mxu0 %v967_v4  ;;  %v983_v16 = vld [vmem:[#allocation5 + $0x74] ss:$8 sps:$4 sm:$0xff]   ;;  %343 = vmatprep.mubr.bf16.mxu0 %v1012_v14  ;;  %v986_v19 = vld [vmem:[#allocation5 + $0x84] ss:$8 sps:$4 sm:$0xff]   ;;  %v988_v21 = vld [vmem:[#allocation5 + $0x80] ss:$8 sps:$4 sm:$0xff]  }
  0x3d   :  { %315 = vmatprep.subr.bf16.mxu0 %v968_v5  ;;  %v1025_v20 = vld [vmem:[%s1334_s2 + $0x8] sm:$0xff]   ;;  %v989_v22 = vld [vmem:[#allocation5 + $0x94] ss:$8 sps:$4 sm:$0xff]   ;;  %v1026_v23 = vld [vmem:[%s1334_s2 + $0x10] sm:$0xff]   ;;  %vm1146_vm0 = vmmov 0   ;;  %vm609_vm1 = vcmask 588800  }
  0x3e   :  { %866 = vmatpush3.bf16.msra.mxu1 %v1025_v20  ;;  %v991_v24 = vld [vmem:[#allocation5 + $0x90] ss:$8 sps:$4 sm:$0xff]   ;;  %v992_v25 = vld [vmem:[#allocation5 + $0xa4] ss:$8 sps:$4 sm:$0xff]   ;;  %v994_v27 = vld [vmem:[#allocation5 + $0xa0] ss:$8 sps:$4 sm:$0xff]   ;;  %879 = vmatprep.mubr.msk.bf16.mxu1 %vm1146_vm0, %v1145_v0 }
  0x3f   :  { %867 = vmatprep.subr.bf16.mxu1 %v1145_v0  ;;  %v1027_v26 = vld [vmem:[%s1334_s2 + $0x18] sm:$0xff]   ;;  %v1028_v29 = vld [vmem:[%s1334_s2 + $0x20] sm:$0xff]   ;;  %v998_v31 = vld [vmem:[#allocation5 + $0xc4] ss:$8 sps:$4 sm:$0xff]  }
  0x40   :  { %316 = vmatpush1.bf16.msra.mxu0 %v970_v6  ;;  %v995_v28 = vld [vmem:[#allocation5 + $0xb4] ss:$8 sps:$4 sm:$0xff]   ;;  %v997_v30 = vld [vmem:[#allocation5 + $0xb0] ss:$8 sps:$4 sm:$0xff]   ;;  %v1029_v32 = vld [vmem:[%s1334_s2 + $0x28] sm:$0xff]  }
  0x41   :  { %317 = vmatprep.subr.bf16.mxu0 %v971_v7  ;;  %v1000_v33 = vld [vmem:[#allocation5 + $0xc0] ss:$8 sps:$4 sm:$0xff]   ;;  %v1001_v34 = vld [vmem:[#allocation5 + $0xd4] ss:$8 sps:$4 sm:$0xff]   ;;  %v1003_v35 = vld [vmem:[#allocation5 + $0xd0] ss:$8 sps:$4 sm:$0xff]  }
  0x42   :  { %868 = vmatpush3.bf16.msra.mxu1 %v1026_v23  ;;  %v1004_v36 = vld [vmem:[#allocation5 + $0xe4] ss:$8 sps:$4 sm:$0xff]   ;;  %v1006_v37 = vld [vmem:[#allocation5 + $0xe0] ss:$8 sps:$4 sm:$0xff]   ;;  %v1007_v38 = vld [vmem:[#allocation5 + $0xf4] ss:$8 sps:$4 sm:$0xff]  }
  0x43   :  { %869 = vmatprep.subr.bf16.mxu1 %v1145_v0  ;;  %v1009_v39 = vld [vmem:[#allocation5 + $0xf0] ss:$8 sps:$4 sm:$0xff]   ;;  %v1013_v41 = vld [vmem:[#allocation2 + $0x14] ss:$8 sps:$4 sm:$0xff]   ;;  %v1016_v43 = vld [vmem:[#allocation2 + $0x24] ss:$8 sps:$4 sm:$0xff]  }
  0x44   :  { %318 = vmatpush1.bf16.msra.mxu0 %v973_v8  ;;  %v1010_v40 = vld [vmem:[#allocation2] ss:$8 sps:$4 sm:$0xff]   ;;  %v1015_v42 = vld [vmem:[#allocation2 + $0x10] ss:$8 sps:$4 sm:$0xff]   ;;  %v1019_v45 = vld [vmem:[#allocation2 + $0x34] ss:$8 sps:$4 sm:$0xff]  }
  0x45   :  { %319 = vmatprep.subr.bf16.mxu0 %v974_v9  ;;  %v1018_v44 = vld [vmem:[#allocation2 + $0x20] ss:$8 sps:$4 sm:$0xff]   ;;  %v1021_v47 = vld [vmem:[#allocation2 + $0x30] ss:$8 sps:$4 sm:$0xff]  }
  0x46   :  { %870 = vmatpush3.bf16.msra.mxu1 %v1027_v26  ;;  %v71_v46 = vld [vmem:[#allocation2 + $0x40] sm:$0xff]  ;;  %v1030_v50 = vld [vmem:[%s1334_s2 + $0x30] sm:$0xff]   ;;  %v1031_v51 = vld [vmem:[%s1334_s2 + $0x38] sm:$0xff]  }
  0x47   :  { %871 = vmatprep.subr.bf16.mxu1 %v1145_v0  ;;  %v786_v48 = vcombine.high %v71_v46, %v71_v46  ;;  %v785_v49 = vcombine.low %v71_v46, %v71_v46  ;;  %v570_v46 = vld [vmem:[%s1336_s4 + $0x18] sm:$0xff] }
  0x48   :  { %320 = vmatpush1.bf16.msra.mxu0 %v976_v10 }
  0x49   :  { %321 = vmatprep.subr.bf16.mxu0 %v977_v11 }
  0x4a   :  { %872 = vmatpush3.bf16.msra.mxu1 %v1028_v29 }
  0x4b   :  { %873 = vmatprep.subr.bf16.mxu1 %v1145_v0 }
  0x4c   :  { %322 = vmatpush1.bf16.msra.mxu0 %v979_v12 }
  0x4d   :  { %323 = vmatprep.subr.bf16.mxu0 %v980_v13 }
  0x4e   :  { %874 = vmatpush3.bf16.msra.mxu1 %v1029_v32 }
  0x4f   :  { %875 = vmatprep.subr.bf16.mxu1 %v1145_v0 }
  0x50   :  { %324 = vmatpush1.bf16.msra.mxu0 %v982_v15 }
  0x51   :  { %325 = vmatprep.subr.bf16.mxu0 %v983_v16 }
  0x52   :  { %876 = vmatpush3.bf16.msra.mxu1 %v1030_v50 }
  0x53   :  { %877 = vmatprep.subr.bf16.mxu1 %v1145_v0 }
  0x54   :  { %326 = vmatpush1.bf16.msra.mxu0 %v985_v17 }
  0x55   :  { %327 = vmatprep.subr.bf16.mxu0 %v986_v19 }
  0x56   :  { %878 = vmatpush3.bf16.msra.mxu1 %v1031_v51 }
  0x58   :  { %328 = vmatpush1.bf16.msra.mxu0 %v988_v21 }
  0x59   :  { %329 = vmatprep.subr.bf16.mxu0 %v989_v22 }
  0x5c   :  { %330 = vmatpush1.bf16.msra.mxu0 %v991_v24 }
  0x5d   :  { %331 = vmatprep.subr.bf16.mxu0 %v992_v25 }
  0x60   :  { %332 = vmatpush1.bf16.msra.mxu0 %v994_v27 }
  0x61   :  { %333 = vmatprep.subr.bf16.mxu0 %v995_v28 }
  0x64   :  { %334 = vmatpush1.bf16.msra.mxu0 %v997_v30 }
  0x65   :  { %335 = vmatprep.subr.bf16.mxu0 %v998_v31 }
  0x68   :  { %336 = vmatpush1.bf16.msra.mxu0 %v1000_v33 }
  0x69   :  { %337 = vmatprep.subr.bf16.mxu0 %v1001_v34 }
  0x6c   :  { %338 = vmatpush1.bf16.msra.mxu0 %v1003_v35 }
  0x6d   :  { %339 = vmatprep.subr.bf16.mxu0 %v1004_v36 }
  0x70   :  { %340 = vmatpush1.bf16.msra.mxu0 %v1006_v37 }
  0x71   :  { %341 = vmatprep.subr.bf16.mxu0 %v1007_v38 }
  0x74   :  { %342 = vmatpush1.bf16.msra.mxu0 %v1009_v39 }
  0x77   :  { %344 = vmatmul.mubr.bf16.vlgmr.msra.gmra.mrb[0].mxu0 %v1010_v40 }
  0x78   :  { %353 = vmatprep.mubr.bf16.mxu0 %v1013_v41  ;;  %v1147_v41 = vmov 0.0|0.0  }
  0x79   :  { %938 = vmatprep.subr.bf16.mxu1 %v1147_v41 }
  0x7f   :  { %354 = vmatmul.mubr.bf16.gmra.mrb[4].mxu0 %v1015_v42  ;;  %v567_v42 = vld [vmem:[%s1336_s4] sm:$0xff] }
  0x80   :  { %363 = vmatprep.mubr.bf16.mxu0 %v1016_v43  ;;  %v569_v43 = vld [vmem:[%s1336_s4 + $0x10] sm:$0xff] }
  0x87   :  { %364 = vmatmul.mubr.bf16.gmra.mrb[8].mxu0 %v1018_v44  ;;  %v1148_v44 = vmov 0  }
  0x88   :  { %373 = vmatprep.mubr.bf16.mxu0 %v1019_v45  ;;  %960 = vset.pattern.permute.xlu0 %v1148_v44  ;;  %v568_v45 = vld [vmem:[%s1336_s4 + $0x8] sm:$0xff] }
  0x89   :  { %961 = vset.pattern.permute.xlu1 %v1148_v44  ;;  %576 = vperm.xlu0 %960, %v567_v42  }
  0x8a   :  { %586 = vperm.xlu1 %961, %v569_v43  }
  0x8d   :  { %581 = vperm.xlu0 %960, %v568_v45  }
  0x8e   :  { %591 = vperm.xlu1 %961, %v570_v46  }
  0x8f   :  { %374 = vmatmul.mubr.bf16.gmra.mrb[12].mxu0 %v1021_v47  ;;  %v571_v47 = vld [vmem:[%s1336_s4 + $0x20] sm:$0xff] }
  0x90   :  { %383 = vmatprep.mubr.bf16.mxu0 %v786_v48  ;;  %v572_v48 = vld [vmem:[%s1336_s4 + $0x28] sm:$0xff] }
  0x91   :  { %596 = vperm.xlu0 %960, %v571_v47  }
  0x92   :  { %601 = vperm.xlu1 %961, %v572_v48  }
  0x97   :  { %384 = vmatmul.mubr.bf16.gmra.mrb[16].mxu0 %v785_v49  ;;  %v573_v49 = vld [vmem:[%s1336_s4 + $0x30] sm:$0xff]  ;;  %s1149_s4 = smov [#allocation8]  }
  0x98   :  { %606 = vperm.xlu0 %960, %v573_v49   ;;  %s764_s8 = sshll.u32 %s1149_s4, 4  ;;  %s765_s8 = int_to_ptr.vmem [resolvable:$true] %s764_s8 }
  0x99   :  { %s1112_s9 = scalar_lea.vmem %s765_s8, 896  ;;  %p1117_p11 = scmp.lt.s32.totalorder %s765_s8, %s765_s8 }
  0x9a   :  { %p1113_p10 = scmp.ne.s32.totalorder %s765_s8, %s1112_s9  ;;  %p1118_p12 = scmp.lt.s32.totalorder %s1112_s9, %s1112_s9 }
  0x9c   :  { %p1119_p13 = por %p1118_p12, %p1117_p11 }
  0x9e   :  { %p1120_p0 = pnand %p1119_p13, %p1113_p10 }
 0x14a   :  { %v345_v52 = vpop.f32.mrb[0].mxu0 }
 0x14b   :  { %v392_v53 = vmul.f32 %v345_v52, %v345_v52  ;;  %v347_v54 = vpop.f32.mrb[1].mxu0 }
 0x14c   :  { %v401_v55 = vmul.f32 %v347_v54, %v347_v54  ;;  %v349_v56 = vpop.f32.mrb[2].mxu0 }
 0x14d   :  { %v393_v57 = vmul.f32 %v349_v56, %v349_v56  ;;  %v351_v58 = vpop.f32.mrb[3].mxu0 }
 0x14e   :  { %v410_v59 = vadd.f32 %v401_v55, %v392_v53  ;;  %v402_v60 = vmul.f32 %v351_v58, %v351_v58 }
 0x150   :  { %v411_v61 = vadd.f32 %v402_v60, %v393_v57 }
 0x152   :  { %v355_v62 = vpop.f32.mrb[4].mxu0  ;;  %v419_v63 = vpack.c.bf16 %v411_v61, %v410_v59 }
 0x153   :  { %v394_v1 = vmul.f32 %v355_v62, %v355_v62  ;;  %v357_v2 = vpop.f32.mrb[5].mxu0 }
 0x154   :  { %v403_v3 = vmul.f32 %v357_v2, %v357_v2  ;;  %v359_v4 = vpop.f32.mrb[6].mxu0  ;;  %880 = vmatmul.mubr.bf16.vlgmr.msra.gmra.mrb[0].mxu1 %v419_v63 }
 0x155   :  { %v395_v5 = vmul.f32 %v359_v4, %v359_v4  ;;  %v361_v6 = vpop.f32.mrb[7].mxu0  ;;  %883 = vmatprep.mubr.msk.bf16.mxu1 %vm1146_vm0, %v1145_v0 }
 0x156   :  { %v412_v7 = vadd.f32 %v403_v3, %v394_v1  ;;  %v404_v8 = vmul.f32 %v361_v6, %v361_v6 }
 0x158   :  { %v413_v9 = vadd.f32 %v404_v8, %v395_v5 }
 0x15a   :  { %v365_v10 = vpop.f32.mrb[8].mxu0  ;;  %v420_v11 = vpack.c.bf16 %v413_v9, %v412_v7  ;;  %v560_v7 = vld [vmem:[#allocation7] sm:$0xff] }
 0x15b   :  { %v396_v12 = vmul.f32 %v365_v10, %v365_v10  ;;  %v367_v13 = vpop.f32.mrb[9].mxu0 }
 0x15c   :  { %v405_v14 = vmul.f32 %v367_v13, %v367_v13  ;;  %v369_v15 = vpop.f32.mrb[10].mxu0  ;;  %884 = vmatmul.mubr.bf16.gmra.mrb[4].mxu1 %v420_v11  ;;  %v562_v13 = vld [vmem:[#allocation7 + $0x10] sm:$0xff] }
 0x15d   :  { %v397_v16 = vmul.f32 %v369_v15, %v369_v15  ;;  %v371_v17 = vpop.f32.mrb[11].mxu0  ;;  %887 = vmatprep.mubr.msk.bf16.mxu1 %vm1146_vm0, %v1145_v0  ;;  %v564_v15 = vld [vmem:[#allocation7 + $0x20] sm:$0xff] }
 0x15e   :  { %v414_v18 = vadd.f32 %v405_v14, %v396_v12  ;;  %v406_v19 = vmul.f32 %v371_v17, %v371_v17  ;;  %v561_v12 = vld [vmem:[#allocation7 + $0x8] sm:$0xff]  ;;  %v563_v14 = vld [vmem:[#allocation7 + $0x18] sm:$0xff]  ;;  %v566_v17 = vld [vmem:[#allocation7 + $0x30] sm:$0xff] }
 0x160   :  { %v415_v20 = vadd.f32 %v406_v19, %v397_v16  ;;  %v565_v16 = vld [vmem:[#allocation7 + $0x28] sm:$0xff] }
 0x162   :  { %v375_v21 = vpop.f32.mrb[12].mxu0  ;;  %v421_v22 = vpack.c.bf16 %v415_v20, %v414_v18  ;;  %v577_v18 = vpop.permute.xlu0 %576 }
 0x163   :  { %v398_v23 = vmul.f32 %v375_v21, %v375_v21  ;;  %v377_v24 = vpop.f32.mrb[13].mxu0 }
 0x164   :  { %v407_v25 = vmul.f32 %v377_v24, %v377_v24  ;;  %v379_v26 = vpop.f32.mrb[14].mxu0  ;;  %888 = vmatmul.mubr.bf16.gmra.mrb[8].mxu1 %v421_v22 }
 0x165   :  { %v399_v27 = vmul.f32 %v379_v26, %v379_v26  ;;  %v381_v28 = vpop.f32.mrb[15].mxu0  ;;  %891 = vmatprep.mubr.msk.bf16.mxu1 %vm1146_vm0, %v1145_v0 }
 0x166   :  { %v416_v29 = vadd.f32 %v407_v25, %v398_v23  ;;  %v408_v30 = vmul.f32 %v381_v28, %v381_v28  ;;  %v582_v22 = vpop.permute.xlu0 %581  ;;  %v587_v25 = vpop.permute.xlu1 %586 }
 0x168   :  { %v417_v31 = vadd.f32 %v408_v30, %v399_v27 }
 0x16a   :  { %v385_v32 = vpop.f32.mrb[16].mxu0  ;;  %v422_v33 = vpack.c.bf16 %v417_v31, %v416_v29 }
 0x16b   :  { %v400_v34 = vmul.f32 %v385_v32, %v385_v32  ;;  %v387_v35 = vpop.f32.mrb[17].mxu0 }
 0x16c   :  { %892 = vmatmul.mubr.bf16.gmra.mrb[12].mxu1 %v422_v33  ;;  %v409_v36 = vmul.f32 %v387_v35, %v387_v35  ;;  %v389_v37 = vpop.f32.mrb[18].mxu0 }
 0x16d   :  { %v390_v38 = vpop.f32.mrb[19].mxu0  ;;  %895 = vmatprep.mubr.msk.bf16.mxu1 %vm1146_vm0, %v1145_v0 }
 0x16e   :  { %v418_v39 = vadd.f32 %v409_v36, %v400_v34 }
 0x170   :  { %v423_v40 = vpack.c.bf16 %v418_v39, %v418_v39  ;;  %v597_v39 = vpop.permute.xlu0 %596 }
 0x174   :  { %896 = vmatmul.mubr.bf16.gmra.mrb[16].mxu1 %v423_v40 }
 0x175   :  { %917 = vmatprep.mubr.msk.f32.mxu1 %vm1146_vm0, %v1145_v0 }
 0x227   :  { %v522_v50 = vpop.f32.mrb[0].mxu1 }
 0x228   :  { %v881_v51 = vpop.f32.mrb[1].mxu1 }
 0x229   :  { %v525_v52 = vpop.f32.mrb[2].mxu1 }
 0x22a   :  { %v939_v53 = vpack.c.bf16 %v525_v52, %v522_v50  ;;  %v882_v54 = vpop.f32.mrb[3].mxu1 }
 0x22c   :  { %940 = vmatpush3.bf16.msra.mxu1 %v939_v53  ;;  %v607_v53 = vpop.permute.xlu0 %606 }
 0x22d   :  { %941 = vmatprep.subr.bf16.mxu1 %v1147_v41 }
 0x22f   :  { %v530_v55 = vpop.f32.mrb[4].mxu1 }
 0x230   :  { %v885_v56 = vpop.f32.mrb[5].mxu1 }
 0x231   :  { %v533_v57 = vpop.f32.mrb[6].mxu1 }
 0x232   :  { %v942_v58 = vpack.c.bf16 %v533_v57, %v530_v55  ;;  %v886_v59 = vpop.f32.mrb[7].mxu1 }
 0x234   :  { %943 = vmatpush3.bf16.msra.mxu1 %v942_v58 }
 0x235   :  { %944 = vmatprep.subr.bf16.mxu1 %v1147_v41 }
 0x237   :  { %v538_v60 = vpop.f32.mrb[8].mxu1 }
 0x238   :  { %v889_v61 = vpop.f32.mrb[9].mxu1 }
 0x239   :  { %v541_v62 = vpop.f32.mrb[10].mxu1 }
 0x23a   :  { %v945_v63 = vpack.c.bf16 %v541_v62, %v538_v60  ;;  %v890_v1 = vpop.f32.mrb[11].mxu1 }
 0x23c   :  { %946 = vmatpush3.bf16.msra.mxu1 %v945_v63 }
 0x23d   :  { %947 = vmatprep.subr.bf16.mxu1 %v1147_v41 }
 0x23f   :  { %v546_v2 = vpop.f32.mrb[12].mxu1 }
 0x240   :  { %v893_v3 = vpop.f32.mrb[13].mxu1 }
 0x241   :  { %v549_v4 = vpop.f32.mrb[14].mxu1 }
 0x242   :  { %v948_v5 = vpack.c.bf16 %v549_v4, %v546_v2  ;;  %v894_v6 = vpop.f32.mrb[15].mxu1 }
 0x244   :  { %949 = vmatpush3.bf16.msra.mxu1 %v948_v5 }
 0x245   :  { %915 = vmatprep.subr.mxu1 %v1145_v0 }
 0x247   :  { %v554_v8 = vpop.f32.mrb[16].mxu1 }
 0x248   :  { %v897_v9 = vpop.f32.mrb[17].mxu1  ;;  %916 = vmatpush3.msra.mxu1 %v554_v8 }
 0x249   :  { %v557_v10 = vpop.f32.mrb[18].mxu1  ;;  %918 = vmatmul.mubr.msk.f32.vlgmr.msra.gmra.mrb[20].mxu1 %vm609_vm1, %v560_v7 }
 0x24a   :  { %v898_v11 = vpop.f32.mrb[19].mxu1  ;;  %920 = vmatprep.mubr.msk.f32.mxu1 %vm1146_vm0, %v1145_v0 }
 0x24d   :  { %921 = vmatmul.mubr.msk.f32.gmra.mrb[22].mxu1 %vm609_vm1, %v561_v12 }
 0x24e   :  { %923 = vmatprep.mubr.msk.f32.mxu1 %vm1146_vm0, %v1145_v0 }
 0x251   :  { %924 = vmatmul.mubr.msk.f32.gmra.mrb[24].mxu1 %vm609_vm1, %v562_v13 }
 0x252   :  { %926 = vmatprep.mubr.msk.f32.mxu1 %vm1146_vm0, %v1145_v0 }
 0x255   :  { %927 = vmatmul.mubr.msk.f32.gmra.mrb[26].mxu1 %vm609_vm1, %v563_v14 }
 0x256   :  { %929 = vmatprep.mubr.msk.f32.mxu1 %vm1146_vm0, %v1145_v0 }
 0x259   :  { %930 = vmatmul.mubr.msk.f32.gmra.mrb[28].mxu1 %vm609_vm1, %v564_v15 }
 0x25a   :  { %932 = vmatprep.mubr.msk.f32.mxu1 %vm1146_vm0, %v1145_v0 }
 0x25d   :  { %933 = vmatmul.mubr.msk.f32.gmra.mrb[30].mxu1 %vm609_vm1, %v565_v16 }
 0x25e   :  { %935 = vmatprep.mubr.msk.f32.mxu1 %vm1146_vm0, %v1145_v0  ;;  %v592_v0 = vpop.permute.xlu1 %591 }
 0x261   :  { %936 = vmatmul.mubr.msk.f32.gmra.mrb[32].mxu1 %vm609_vm1, %v566_v17 }
 0x262   :  { %v602_v47 = vpop.permute.xlu1 %601 }
 0x31c   :  { %v697_v19 = vpop.f32.mrb[20].mxu1 }
 0x31d   :  { %v698_v20 = vadd.f32 %v697_v19, %v577_v18  ;;  %v919_v21 = vpop.f32.mrb[21].mxu1 }
 0x31f   :  { %v731_v23 = vadd.f32 1e-08, %v698_v20 }
 0x320   :  { %v702_v24 = vpop.f32.mrb[22].mxu1 }
 0x321   :  { %1032 = vlog2.f32 %v731_v23  ;;  %v703_v26 = vadd.f32 %v702_v24, %v582_v22  ;;  %v922_v27 = vpop.f32.mrb[23].mxu1 }
 0x323   :  { %v732_v28 = vadd.f32 1e-08, %v703_v26 }
 0x324   :  { %v707_v29 = vpop.f32.mrb[24].mxu1 }
 0x325   :  { %1034 = vlog2.f32 %v732_v28  ;;  %v925_v30 = vpop.f32.mrb[25].mxu1  ;;  %v708_v31 = vadd.f32 %v707_v29, %v587_v25 }
 0x327   :  { %v733_v32 = vadd.f32 1e-08, %v708_v31 }
 0x328   :  { %v712_v33 = vpop.f32.mrb[26].mxu1 }
 0x329   :  { %1036 = vlog2.f32 %v733_v32  ;;  %v928_v34 = vpop.f32.mrb[27].mxu1  ;;  %v713_v35 = vadd.f32 %v712_v33, %v592_v0 }
 0x32b   :  { %v1033_v36 = vpop.eup %1032  ;;  %v734_v37 = vadd.f32 1e-08, %v713_v35 }
 0x32c   :  { %v739_v38 = vmul.f32 0.6931472, %v1033_v36  ;;  %v717_v40 = vpop.f32.mrb[28].mxu1 }
 0x32d   :  { %v718_v41 = vadd.f32 %v717_v40, %v597_v39  ;;  %v931_v42 = vpop.f32.mrb[29].mxu1  ;;  %1038 = vlog2.f32 %v734_v37 }
 0x32e   :  { %752 = vst [vmem:[#allocation8] sm:$0xff] %v739_v38 }
 0x32f   :  { %v1035_v43 = vpop.eup %1034  ;;  %v735_v44 = vadd.f32 1e-08, %v718_v41 }
 0x330   :  { %v741_v45 = vmul.f32 0.6931472, %v1035_v43  ;;  %v722_v46 = vpop.f32.mrb[30].mxu1 }
 0x331   :  { %1040 = vlog2.f32 %v735_v44  ;;  %v934_v48 = vpop.f32.mrb[31].mxu1  ;;  %v723_v49 = vadd.f32 %v722_v46, %v602_v47 }
 0x332   :  { %753 = vst [vmem:[#allocation8 + $0x8] sm:$0xff] %v741_v45 }
 0x333   :  { %v1037_v50 = vpop.eup %1036  ;;  %v736_v51 = vadd.f32 1e-08, %v723_v49 }
 0x334   :  { %v743_v52 = vmul.f32 0.6931472, %v1037_v50  ;;  %v727_v54 = vpop.f32.mrb[32].mxu1 }
 0x335   :  { %v728_v55 = vadd.f32 %v727_v54, %v607_v53  ;;  %1042 = vlog2.f32 %v736_v51  ;;  %v937_v56 = vpop.f32.mrb[33].mxu1 }
 0x336   :  { %754 = vst [vmem:[#allocation8 + $0x10] sm:$0xff] %v743_v52 }
 0x337   :  { %v1039_v57 = vpop.eup %1038  ;;  %v737_v58 = vadd.f32 1e-08, %v728_v55 }
 0x338   :  { %v745_v59 = vmul.f32 0.6931472, %v1039_v57 }
 0x339   :  { %1044 = vlog2.f32 %v737_v58 }
 0x33a   :  { %755 = vst [vmem:[#allocation8 + $0x18] sm:$0xff] %v745_v59 }
 0x33b   :  { %v1041_v60 = vpop.eup %1040 }
 0x33c   :  { %v747_v61 = vmul.f32 0.6931472, %v1041_v60 }
 0x33e   :  { %756 = vst [vmem:[#allocation8 + $0x20] sm:$0xff] %v747_v61 }
 0x33f   :  { %v1043_v62 = vpop.eup %1042 }
 0x340   :  { %v749_v63 = vmul.f32 0.6931472, %v1043_v62 }
 0x342   :  { %757 = vst [vmem:[#allocation8 + $0x28] sm:$0xff] %v749_v63 }
 0x343   :  { %v1045_v1 = vpop.eup %1044 }
 0x344   :  { %v751_v2 = vmul.f32 0.6931472, %v1045_v1 }
 0x346   :  { %758 = vst [vmem:[#allocation8 + $0x30] sm:$0xff] %v751_v2 }
 0x347   :  { %1123 = shalt.err (!%p1120_p0)
}
 0x348   :  { %s1124_s12 = scalar_lea.hbm %s1337_s5, 896 }
 0x349   :  { %p1125_p1 = scmp.ne.s32.totalorder %s1337_s5, %s1124_s12  ;;  %p1128_p2 = scmp.lt.u32.totalorder %s1124_s12, %s1337_s5 }
 0x34b   :  { %p1130_p3 = pnand %p1128_p2, %p1125_p1 }
 0x34d   :  { %1133 = shalt.err (!%p1130_p3)
}
 0x34e   :  { %770 = dma.vmem_to_hbm [thread:$0]  %s765_s8, 896, %s1337_s5, [#allocation4], %s1142_s30, %s1142_s30, %s1143_s6  }
 0x34f   :  { %1138 = dma.done.wait [#allocation4], 896  }
 0x350   :  { %1139 = vsyncadd [#allocation4], 4294966400 }
 0x351   :  { %774 = vsyncpa [#allocation3], 1 }
 0x352   :  { %775 = vsyncpa [#allocation6], 1 }
 0x353   :  { %776 = vsyncpa [#allocation4], 1 }

</bundles_post_ra>
